<compile_context>
chip_gen: v7x
topology: tpu7x:2x2x1
jax: 0.10.0
libtpu: 0.0.40
codegen_flags: <defaults>
</compile_context>

<pallas_src>
import functools

import jax
import jax.numpy as jnp
from jax.experimental import pallas as pl
from jax.experimental.pallas import tpu as pltpu

# ----------------------------- small demo shapes ------------------------------
C_IN = 128         # adapter channel width (lane-dense; real CLIP uses 512/1024/2048)
REDUCTION = 4      # bottleneck reduction factor
HIDDEN = C_IN // REDUCTION
BATCH = 8          # number of feature rows


# -------------------------------- Pallas kernel --------------------------------
def adapter_nc_kernel(x_ref, w1_ref, w2_ref, o_ref):
    """relu(relu(x @ W1) @ W2) for one (block_m, c_in) tile of rows."""
    # First GEMM: native-dtype operands on the MXU, f32 accumulation.
    h = jnp.dot(x_ref[...], w1_ref[...], preferred_element_type=jnp.float32)
    # ReLU on the f32 accumulator; cast back to the weight dtype so the second
    # GEMM also uses the native (e.g. bf16) MXU operand path.
    h = jnp.maximum(h, 0.0).astype(w2_ref.dtype)
    y = jnp.dot(h, w2_ref[...], preferred_element_type=jnp.float32)
    y = jnp.maximum(y, 0.0)
    o_ref[...] = y.astype(o_ref.dtype)          # downcast only at the final store


# ---------------------------------- wrapper -------------------------------------
def adapter_nc(x, w1, w2, *, block_m=1024, vmem_budget_bytes=48 * 1024 * 1024):
    """Apply Adapter_nc. x: (..., c_in); w1: (c_in, hidden); w2: (hidden, c_in)."""
    c_in, hidden = w1.shape
    assert w2.shape == (hidden, c_in)
    orig_shape = x.shape
    x2 = x.reshape(-1, c_in)
    M = x2.shape[0]

    # Row tile: as large as possible (mem/overhead-bound kernel), multiple of 8,
    # never larger than M -- so the only padded block is a standard partial
    # boundary block, which Pallas handles with masked stores.
    if M < 8:
        bm = M                               # full-extent block is always legal
    else:
        bm = min(block_m, M)
        bm -= bm % 8

    # Shrink the tile if double-buffered activations + resident weights would
    # exceed the VMEM budget (v7x has only 64 MiB physical VMEM per core).
    def _vmem_bytes(b):
        act = 2 * 2 * b * c_in * x2.dtype.itemsize               # x + out, 2 buffers each
        wts = 2 * (w1.size * w1.dtype.itemsize + w2.size * w2.dtype.itemsize)
        return act + wts

    while bm > 8 and _vmem_bytes(bm) > vmem_budget_bytes:
        bm = max(8, (bm // 2) - (bm // 2) % 8)

    grid = (pl.cdiv(M, bm),)

    # Raise the scoped VMEM limit only when the conservative default is too small.
    need = _vmem_bytes(bm)
    vmem_limit = (
        int(min(need * 5 // 4, 60 * 1024 * 1024)) if need > 16 * 1024 * 1024 else None
    )

    out = pl.pallas_call(
        adapter_nc_kernel,
        grid=grid,
        in_specs=[
            pl.BlockSpec((bm, c_in), lambda i: (i, 0)),
            # Weights: constant index map -> DMA'd once, fully VMEM-resident.
            # NOTE: for very wide c_in on v7x, pipeline_mode=pl.Buffered(1) on these
            # two specs would drop their second VMEM buffer; at these sizes it is noise.
            pl.BlockSpec((c_in, hidden), lambda i: (0, 0)),
            pl.BlockSpec((hidden, c_in), lambda i: (0, 0)),
        ],
        out_specs=pl.BlockSpec((bm, c_in), lambda i: (i, 0)),
        out_shape=jax.ShapeDtypeStruct((M, c_in), x.dtype),
        compiler_params=pltpu.CompilerParams(
            dimension_semantics=("parallel",),
            vmem_limit_bytes=vmem_limit,
        ),
    )(x2, w1, w2)

    return out.reshape(orig_shape)


# ----------------------------------- main ---------------------------------------
if __name__ == "__main__":
    key = jax.random.PRNGKey(0)
    k_x, k_w1, k_w2 = jax.random.split(key, 3)

    # Weight layout: (in_dim, out_dim) so the kernel computes x @ W directly
    # (== PyTorch's x @ weight.T with weight stored (out, in)).
    x = jax.random.normal(k_x, (BATCH, C_IN), jnp.float32)
    w1 = 0.1 * jax.random.normal(k_w1, (C_IN, HIDDEN), jnp.float32)
    w2 = 0.1 * jax.random.normal(k_w2, (HIDDEN, C_IN), jnp.float32)

    ref_fn = lambda x_, w1_, w2_: jnp.maximum(jnp.maximum(x_ @ w1_, 0.0) @ w2_, 0.0)

    # --- f32, evenly divisible batch ---
    fn = jax.jit(functools.partial(adapter_nc, w1=w1, w2=w2))
    out = jax.block_until_ready(fn(x))
    ref = ref_fn(x, w1, w2)
    assert out.shape == (BATCH, C_IN), out.shape
    assert bool(jnp.all(jnp.isfinite(out)))
    assert bool(jnp.allclose(out, ref, atol=1e-5, rtol=1e-5))

    # --- f32, ragged batch with a small explicit tile: multi-step cdiv grid with a
    #     padded (masked) boundary block ---
    xr = jax.random.normal(k_x, (20, C_IN), jnp.float32)
    out_r = jax.block_until_ready(
        jax.jit(functools.partial(adapter_nc, w1=w1, w2=w2, block_m=8))(xr)
    )
    assert bool(jnp.allclose(out_r, ref_fn(xr, w1, w2), atol=1e-5, rtol=1e-5))

    # --- bf16 activations & weights at the wrapper boundary (f32 accumulation) ---
    xb = x.astype(jnp.bfloat16)
    w1b = w1.astype(jnp.bfloat16)
    w2b = w2.astype(jnp.bfloat16)
    out_b = jax.block_until_ready(
        jax.jit(functools.partial(adapter_nc, w1=w1b, w2=w2b))(xb)
    )
    ref_b = ref_fn(
        xb.astype(jnp.float32), w1b.astype(jnp.float32), w2b.astype(jnp.float32)
    )
    assert out_b.dtype == jnp.bfloat16
    assert bool(jnp.allclose(out_b.astype(jnp.float32), ref_b, atol=5e-2, rtol=5e-2))

    print("KERNEL_OK")
</pallas_src>

<mosaic_0001>
module attributes {stable_mosaic.version = 11 : i64} {
  func.func @adapter_nc_kernel(%arg0: i32, %arg1: memref<8x128xf32, #tpu.memory_space<vmem>>, %arg2: memref<128x32xf32, #tpu.memory_space<vmem>>, %arg3: memref<32x128xf32, #tpu.memory_space<vmem>>, %arg4: memref<8x128xf32, #tpu.memory_space<vmem>>) attributes {dimension_semantics = [#tpu.dimension_semantics<parallel>], iteration_bounds = array<i64: 1>, scalar_prefetch = 0 : i64, scratch_operands = 0 : i64, tpu.core_type = #tpu.core_type<tc>, window_params = [{transform_indices = @transform_0, window_bounds = array<i64: 8, 128>}, {pipeline_mode = #tpu.pipeline_mode<synchronous>, transform_indices = @transform_1, window_bounds = array<i64: 128, 32>}, {pipeline_mode = #tpu.pipeline_mode<synchronous>, transform_indices = @transform_2, window_bounds = array<i64: 32, 128>}, {transform_indices = @transform_3, window_bounds = array<i64: 8, 128>}]} {
    %c0 = arith.constant 0 : index
    %c0_0 = arith.constant 0 : index
    %0 = vector.load %arg1[%c0, %c0_0] : memref<8x128xf32, #tpu.memory_space<vmem>>, vector<8x128xf32>
    %c0_1 = arith.constant 0 : index
    %c0_2 = arith.constant 0 : index
    %1 = vector.load %arg2[%c0_1, %c0_2] : memref<128x32xf32, #tpu.memory_space<vmem>>, vector<128x32xf32>
    %cst = arith.constant dense<0.000000e+00> : vector<8x32xf32>
    %2 = tpu.matmul %0, %1, %cst {dimension_numbers = #tpu.dot_dimension_numbers<[1], [0], [0], [1], [0, 0, 1, 1], [], []>} : vector<8x128xf32>, vector<128x32xf32>, vector<8x32xf32> -> vector<8x32xf32>
    %cst_3 = arith.constant 0.000000e+00 : f32
    %3 = vector.broadcast %cst_3 : f32 to vector<8x32xf32>
    %4 = arith.maximumf %2, %3 : vector<8x32xf32>
    %c0_4 = arith.constant 0 : index
    %c0_5 = arith.constant 0 : index
    %5 = vector.load %arg3[%c0_4, %c0_5] : memref<32x128xf32, #tpu.memory_space<vmem>>, vector<32x128xf32>
    %cst_6 = arith.constant dense<0.000000e+00> : vector<8x128xf32>
    %6 = tpu.matmul %4, %5, %cst_6 {dimension_numbers = #tpu.dot_dimension_numbers<[1], [0], [0], [1], [0, 0, 1, 1], [], []>} : vector<8x32xf32>, vector<32x128xf32>, vector<8x128xf32> -> vector<8x128xf32>
    %cst_7 = arith.constant 0.000000e+00 : f32
    %7 = vector.broadcast %cst_7 : f32 to vector<8x128xf32>
    %8 = arith.maximumf %6, %7 : vector<8x128xf32>
    %c0_8 = arith.constant 0 : index
    %c0_9 = arith.constant 0 : index
    %9 = vector.load %arg4[%c0_8, %c0_9] : memref<8x128xf32, #tpu.memory_space<vmem>>, vector<8x128xf32>
    tpu.vector_store %arg4[%c0_8, %c0_9], %8 {strides = array<i32>} : memref<8x128xf32, #tpu.memory_space<vmem>>, vector<8x128xf32>,
    return
  }
  func.func @transform_0(%arg0: i32) -> (i32, i32) {
    %c0_i32 = arith.constant 0 : i32
    %c0_i32_0 = arith.constant 0 : i32
    return %arg0, %c0_i32 : i32, i32
  }
  func.func @transform_1(%arg0: i32) -> (i32, i32) {
    %c0_i32 = arith.constant 0 : i32
    %c0_i32_0 = arith.constant 0 : i32
    %c0_i32_1 = arith.constant 0 : i32
    return %c0_i32, %c0_i32_0 : i32, i32
  }
  func.func @transform_2(%arg0: i32) -> (i32, i32) {
    %c0_i32 = arith.constant 0 : i32
    %c0_i32_0 = arith.constant 0 : i32
    %c0_i32_1 = arith.constant 0 : i32
    return %c0_i32, %c0_i32_0 : i32, i32
  }
  func.func @transform_3(%arg0: i32) -> (i32, i32) {
    %c0_i32 = arith.constant 0 : i32
    %c0_i32_0 = arith.constant 0 : i32
    return %arg0, %c0_i32 : i32, i32
  }
}

</mosaic_0001>

<bundles_post_ra>
// kernel: adapter_nc.1
= control target key start
LH: loop header
LB: loop body
LE: loop exit
PB: predicated region body
PF: predicated region fallthrough
CT: control target
= control target key end

     0   :  { %8 = vsyncpa [#allocation3], 0  ;;  %s523_s0 = inlined_call_operand.hbm [shape: f32[8,128], index: 0, kind: input, shape index: {}]   ;;  %s524_s1 = inlined_call_operand.hbm [shape: f32[128,32], index: 1, kind: input, shape index: {}]   ;;  %s525_s2 = inlined_call_operand.hbm [shape: f32[32,128], index: 2, kind: input, shape index: {}]   ;;  %s526_s3 = inlined_call_operand.hbm [shape: f32[8,128], index: 3, kind: output, shape index: {}]  }
   0x1   :  { %9 = vsyncpa [#allocation6], 0 }
   0x2   :  { %10 = vsyncpa [#allocation4], 0  ;;  %s440_s12 = smov [#allocation5]   ;;  %s346_s16 = scalar_lea.hbm %s524_s1, 2048 }
   0x3   :  { %s26_s13 = sshll.u32 %s440_s12, 4  ;;  %p347_p0 = scmp.ne.s32.totalorder %s524_s1, %s346_s16  ;;  %s27_s13 = int_to_ptr.vmem [resolvable:$true] %s26_s13 }
   0x4   :  { %p350_p1 = scmp.lt.u32.totalorder %s346_s16, %s524_s1 }
   0x6   :  { %p352_p2 = pnand %p350_p1, %p347_p0 }
   0x8   :  { %355 = shalt.err (!%p352_p2)
}
   0x9   :  { %s356_s21 = scalar_lea.vmem %s27_s13, 2048  ;;  %p361_p4 = scmp.lt.s32.totalorder %s27_s13, %s27_s13 }
   0xa   :  { %p357_p3 = scmp.ne.s32.totalorder %s27_s13, %s356_s21  ;;  %p362_p5 = scmp.lt.s32.totalorder %s356_s21, %s356_s21 }
   0xc   :  { %p363_p6 = por %p362_p5, %p361_p4 }
   0xe   :  { %p364_p7 = pnand %p363_p6, %p357_p3 }
  0x10   :  { %367 = shalt.err (!%p364_p7)
}
  0x11   :  { %s441_s22 = smov 128   ;;  %s442_s23 = smov 8  }
  0x12   :  { %32 = dma.hbm_to_vmem [thread:$0]  %s524_s1, 2048, %s27_s13, [#allocation6], %s441_s22, %s441_s22, %s442_s23  }
  0x13   :  { %s443_s26 = smov [#allocation2]   ;;  %s444_s28 = smov [#allocation7]  }
  0x14   :  { %s17_s27 = sshll.u32 %s443_s26, 4  ;;  %s38_s29 = sshll.u32 %s444_s28, 4  ;;  %s18_s27 = int_to_ptr.vmem [resolvable:$true] %s17_s27  ;;  %s39_s29 = int_to_ptr.vmem [resolvable:$true] %s38_s29 }
  0x15   :  { %s368_s5 = scalar_lea.hbm %s523_s0, 128 }
  0x16   :  { %p369_p8 = scmp.ne.s32.totalorder %s523_s0, %s368_s5  ;;  %p372_p9 = scmp.lt.u32.totalorder %s368_s5, %s523_s0 }
  0x18   :  { %p374_p10 = pnand %p372_p9, %p369_p8 }
  0x1a   :  { %377 = shalt.err (!%p374_p10)
}
  0x1b   :  { %s378_s1 = scalar_lea.vmem %s18_s27, 128  ;;  %p383_p12 = scmp.lt.s32.totalorder %s18_s27, %s18_s27 }
  0x1c   :  { %p379_p11 = scmp.ne.s32.totalorder %s18_s27, %s378_s1  ;;  %p384_p13 = scmp.lt.s32.totalorder %s378_s1, %s378_s1 }
  0x1e   :  { %p385_p0 = por %p384_p13, %p383_p12 }
  0x20   :  { %p386_p1 = pnand %p385_p0, %p379_p11 }
  0x22   :  { %389 = shalt.err (!%p386_p1)
}
  0x23   :  { %20 = dma.hbm_to_vmem [thread:$0]  %s523_s0, 128, %s18_s27, [#allocation3]  }
  0x24   :  { %s390_s14 = scalar_lea.hbm %s525_s2, 512 }
  0x25   :  { %p391_p2 = scmp.ne.s32.totalorder %s525_s2, %s390_s14  ;;  %p394_p3 = scmp.lt.u32.totalorder %s390_s14, %s525_s2 }
  0x27   :  { %p396_p4 = pnand %p394_p3, %p391_p2 }
  0x29   :  { %399 = shalt.err (!%p396_p4)
}
  0x2a   :  { %s400_s19 = scalar_lea.vmem %s39_s29, 512  ;;  %p405_p6 = scmp.lt.s32.totalorder %s39_s29, %s39_s29 }
  0x2b   :  { %p401_p5 = scmp.ne.s32.totalorder %s39_s29, %s400_s19  ;;  %p406_p7 = scmp.lt.s32.totalorder %s400_s19, %s400_s19 }
  0x2d   :  { %p407_p8 = por %p406_p7, %p405_p6 }
  0x2f   :  { %p408_p9 = pnand %p407_p8, %p401_p5 }
  0x31   :  { %411 = shalt.err (!%p408_p9)
}
  0x32   :  { %44 = dma.hbm_to_vmem [thread:$0]  %s525_s2, 512, %s39_s29, [#allocation6], %s441_s22, %s441_s22, %s442_s23  }
  0x33   :  { %434 = dma.done.wait [#allocation3], 128  }
  0x34   :  { %435 = vsyncadd [#allocation3], 4294967168 }
  0x35   :  { %436 = dma.done.wait [#allocation6], 2560  }
  0x36   :  { %437 = vsyncadd [#allocation6], 4294964736  ;;  %v445_v0 = vmov 0.0|0.0   ;;  %vm446_vm0 = vmmov 0   ;;  %v447_v1 = vmov 0.0   ;;  %v55_v2 = vld [vmem:[#allocation5] sm:$0xff] }
  0x37   :  { %307 = vmatprep.subr.bf16.mxu0 %v445_v0  ;;  %293 = vmatprep.mubr.msk.f32.mxu0 %vm446_vm0, %v447_v1  ;;  %v56_v3 = vld [vmem:[#allocation5 + $0x8] sm:$0xff]  ;;  %v57_v4 = vld [vmem:[#allocation5 + $0x10] sm:$0xff]  ;;  %v58_v6 = vld [vmem:[#allocation5 + $0x18] sm:$0xff]  ;;  %vm146_vm1 = vcmask 261120   ;;  %s448_s2 = smov [#allocation8]  }
  0x38   :  { %331 = vmatprep.subr.bf16.mxu1 %v445_v0  ;;  %304 = vmatprep.mubr.msk.f32.mxu1 %vm446_vm0, %v447_v1  ;;  %v308_v5 = vpack.c.bf16 %v56_v3, %v55_v2  ;;  %v311_v7 = vpack.c.bf16 %v58_v6, %v57_v4  ;;  %v59_v8 = vld [vmem:[#allocation5 + $0x20] sm:$0xff]  ;;  %v60_v9 = vld [vmem:[#allocation5 + $0x28] sm:$0xff]  ;;  %v61_v14 = vld [vmem:[#allocation5 + $0x30] sm:$0xff]  ;;  %s228_s21 = sshll.u32 %s448_s2, 4  ;;  %s229_s21 = int_to_ptr.vmem [resolvable:$true] %s228_s21 }
  0x39   :  { %v142_v10 = vld [vmem:[#allocation7] sm:$0xff]  ;;  %v143_v11 = vld [vmem:[#allocation7 + $0x8] sm:$0xff]  ;;  %v314_v12 = vpack.c.bf16 %v60_v9, %v59_v8  ;;  %v62_v15 = vld [vmem:[#allocation5 + $0x38] sm:$0xff]  ;;  %s412_s22 = scalar_lea.vmem %s229_s21, 128  ;;  %p417_p11 = scmp.lt.s32.totalorder %s229_s21, %s229_s21 }
  0x3a   :  { %309 = vmatpush3.bf16.msra.mxu0 %v308_v5  ;;  %v332_v13 = vpack.c.bf16 %v143_v11, %v142_v10  ;;  %v317_v16 = vpack.c.bf16 %v62_v15, %v61_v14  ;;  %v63_v17 = vld [vmem:[#allocation5 + $0x40] sm:$0xff]  ;;  %v64_v18 = vld [vmem:[#allocation5 + $0x48] sm:$0xff]  ;;  %v65_v20 = vld [vmem:[#allocation5 + $0x50] sm:$0xff]  ;;  %p413_p10 = scmp.ne.s32.totalorder %s229_s21, %s412_s22  ;;  %p418_p12 = scmp.lt.s32.totalorder %s412_s22, %s412_s22 }
  0x3b   :  { %310 = vmatprep.subr.bf16.mxu0 %v445_v0  ;;  %v320_v19 = vpack.c.bf16 %v64_v18, %v63_v17  ;;  %v66_v21 = vld [vmem:[#allocation5 + $0x58] sm:$0xff]  ;;  %v67_v23 = vld [vmem:[#allocation5 + $0x60] sm:$0xff]  ;;  %v68_v24 = vld [vmem:[#allocation5 + $0x68] sm:$0xff] }
  0x3c   :  { %333 = vmatpush3.bf16.msra.mxu1 %v332_v13  ;;  %v323_v22 = vpack.c.bf16 %v66_v21, %v65_v20  ;;  %v326_v25 = vpack.c.bf16 %v68_v24, %v67_v23  ;;  %v69_v26 = vld [vmem:[#allocation5 + $0x70] sm:$0xff]  ;;  %v70_v27 = vld [vmem:[#allocation5 + $0x78] sm:$0xff]  ;;  %p419_p13 = por %p418_p12, %p417_p11 }
  0x3d   :  { %334 = vmatprep.subr.bf16.mxu1 %v445_v0  ;;  %v329_v28 = vpack.c.bf16 %v70_v27, %v69_v26  ;;  %v54_v29 = vld [vmem:[#allocation2] sm:$0xff]  ;;  %v144_v30 = vld [vmem:[#allocation7 + $0x10] sm:$0xff] }
  0x3e   :  { %312 = vmatpush3.bf16.msra.mxu0 %v311_v7  ;;  %v145_v31 = vld [vmem:[#allocation7 + $0x18] sm:$0xff]  ;;  %p420_p0 = pnand %p419_p13, %p413_p10 }
  0x3f   :  { %313 = vmatprep.subr.bf16.mxu0 %v445_v0  ;;  %v335_v32 = vpack.c.bf16 %v145_v31, %v144_v30 }
  0x41   :  { %336 = vmatpush3.bf16.msra.mxu1 %v335_v32 }
  0x42   :  { %315 = vmatpush3.bf16.msra.mxu0 %v314_v12 }
  0x43   :  { %316 = vmatprep.subr.bf16.mxu0 %v445_v0 }
  0x46   :  { %318 = vmatpush3.bf16.msra.mxu0 %v317_v16 }
  0x47   :  { %319 = vmatprep.subr.bf16.mxu0 %v445_v0 }
  0x4a   :  { %321 = vmatpush3.bf16.msra.mxu0 %v320_v19 }
  0x4b   :  { %322 = vmatprep.subr.bf16.mxu0 %v445_v0 }
  0x4e   :  { %324 = vmatpush3.bf16.msra.mxu0 %v323_v22 }
  0x4f   :  { %325 = vmatprep.subr.bf16.mxu0 %v445_v0 }
  0x52   :  { %327 = vmatpush3.bf16.msra.mxu0 %v326_v25 }
  0x53   :  { %328 = vmatprep.subr.bf16.mxu0 %v445_v0 }
  0x56   :  { %330 = vmatpush3.bf16.msra.mxu0 %v329_v28 }
  0x59   :  { %294 = vmatmul.mubr.f32.vlgmr.msra.gmra.mrb[0].mxu0 %v54_v29 }
 0x12c   :  { %v137_v33 = vpop.f32.mrb[0].mxu0 }
 0x12d   :  { %v141_v34 = vmax.f32 %v137_v33, 0.0  ;;  %v295_v35 = vpop.f32.mrb[1].mxu0 }
 0x12f   :  { %305 = vmatmul.mubr.msk.f32.vlgmr.msra.gmra.mrb[0].mxu1 %vm146_vm1, %v141_v34 }
 0x202   :  { %v216_v36 = vpop.f32.mrb[0].mxu1 }
 0x203   :  { %v220_v37 = vmax.f32 %v216_v36, 0.0  ;;  %v306_v38 = vpop.f32.mrb[1].mxu1 }
 0x205   :  { %221 = vst [vmem:[#allocation8] sm:$0xff] %v220_v37 }
 0x206   :  { %423 = shalt.err (!%p420_p0)
}
 0x207   :  { %s424_s25 = scalar_lea.hbm %s526_s3, 128 }
 0x208   :  { %p425_p1 = scmp.ne.s32.totalorder %s526_s3, %s424_s25  ;;  %p428_p2 = scmp.lt.u32.totalorder %s424_s25, %s526_s3 }
 0x20a   :  { %p430_p3 = pnand %p428_p2, %p425_p1 }
 0x20c   :  { %433 = shalt.err (!%p430_p3)
}
 0x20d   :  { %231 = dma.vmem_to_hbm [thread:$0]  %s229_s21, 128, %s526_s3, [#allocation4]  }
 0x20e   :  { %438 = dma.done.wait [#allocation4], 128  }
 0x20f   :  { %439 = vsyncadd [#allocation4], 4294967168 }
 0x210   :  { %235 = vsyncpa [#allocation3], 1 }
 0x211   :  { %236 = vsyncpa [#allocation6], 1 }
 0x212   :  { %237 = vsyncpa [#allocation4], 1 }

</bundles_post_ra>
